<compile_context>
chip_gen: v6e
topology: v6e:2x2x1
jax: 0.10.0
libtpu: 0.0.40
codegen_flags: <defaults>
</compile_context>

<pallas_src>
import functools

import jax
import jax.numpy as jnp
from jax import lax
from jax.experimental import pallas as pl
from jax.experimental.pallas import tpu as pltpu


def _layer_norm_kernel(*refs, eps, has_bias):
    # refs: (x_ref, g_ref[, b_ref], o_ref)
    if has_bias:
        x_ref, g_ref, b_ref, o_ref = refs
    else:
        x_ref, g_ref, o_ref = refs
        b_ref = None

    # x_ref/o_ref: (C, T)   g_ref/b_ref: (C, 1) float32
    xv = x_ref[...].astype(jnp.float32)                 # compute in f32
    mean = jnp.mean(xv, axis=0, keepdims=True)          # (1, T) reduce over C
    xc = xv - mean
    var = jnp.mean(xc * xc, axis=0, keepdims=True)      # unbiased=False
    inv = lax.rsqrt(var + eps)                          # EUP rsqrt (free slot)
    out = xc * inv * g_ref[...]
    if has_bias:
        out = out + b_ref[...]
    o_ref[...] = out.astype(o_ref.dtype)


def _vmem_budget():
    """(target_tile_bytes, vmem_limit_bytes) chosen per TPU generation."""
    vmem = None
    try:
        info = pltpu.get_tpu_info()
        vmem = getattr(info, "vmem_capacity_bytes", None)
    except Exception:
        vmem = None
    if vmem is not None and vmem >= 128 * 1024 * 1024:
        # v5e / v6e: 128 MiB physical VMEM -> big tiles, long DMA streams.
        return 8 * 1024 * 1024, 64 * 1024 * 1024
    # v7x (64 MiB per TC) or unknown: stay conservative.
    return 4 * 1024 * 1024, 36 * 1024 * 1024


def _choose_spatial_tile(hw, c, *, target_bytes, batch, min_total_steps=4):
    """Lane tile T: multiple of 128 (unless hw < 128), sized to ~target_bytes
    of f32 working set, shrunk if needed to guarantee enough grid steps."""
    if hw <= 128:
        return hw                                   # tiny map: one (masked) block
    hw128 = (hw // 128) * 128                       # largest 128-multiple <= hw
    # Budget against the f32 working set (upcast temporaries dominate for bf16).
    max_lanes = max(128, (target_bytes // max(1, c * 4)) // 128 * 128)
    t = min(hw128, max_lanes)
    # Guarantee enough total grid steps for megacore split + DMA pipelining.
    while t > 128 and batch * -(-hw // t) < min_total_steps:
        t = max(128, ((t // 2) // 128) * 128)
    return t


def layer_norm(x, g, b=None):
    """Channel-wise LayerNorm over NCHW.

    x: (B, C, H, W); g: broadcastable to (1, C, 1, 1); b: same as g or None.
    """
    B, C, H, W = x.shape
    HW = H * W
    eps = 1e-5 if x.dtype == jnp.float32 else 1e-3
    has_bias = b is not None

    x3 = x.reshape(B, C, HW)
    # Keep affine params in f32 end-to-end (no bf16 round-trip, negligible VMEM).
    g2 = jnp.asarray(g).reshape(C, 1).astype(jnp.float32)

    target_bytes, vmem_limit = _vmem_budget()
    T = _choose_spatial_tile(HW, C, target_bytes=target_bytes, batch=B)
    n_s = pl.cdiv(HW, T)

    in_specs = [
        # batch dim squeezed -> kernel sees clean 2D (C, T) refs
        pl.BlockSpec((None, C, T), lambda bi, si: (bi, 0, si)),
        pl.BlockSpec((C, 1), lambda bi, si: (0, 0)),         # g (shared)
    ]
    operands = [x3, g2]
    if has_bias:
        in_specs.append(pl.BlockSpec((C, 1), lambda bi, si: (0, 0)))  # b (shared)
        operands.append(jnp.asarray(b).reshape(C, 1).astype(jnp.float32))

    out3 = pl.pallas_call(
        functools.partial(_layer_norm_kernel, eps=eps, has_bias=has_bias),
        out_shape=jax.ShapeDtypeStruct((B, C, HW), x.dtype),
        grid_spec=pltpu.PrefetchScalarGridSpec(
            num_scalar_prefetch=0,
            grid=(B, n_s),
            in_specs=in_specs,
            out_specs=pl.BlockSpec((None, C, T), lambda bi, si: (bi, 0, si)),
        ),
        compiler_params=pltpu.CompilerParams(
            dimension_semantics=("parallel", "parallel"),
            vmem_limit_bytes=vmem_limit,
        ),
    )(*operands)

    return out3.reshape(B, C, H, W)


def _reference(x, g, b):
    eps = 1e-5 if x.dtype == jnp.float32 else 1e-3
    mean = jnp.mean(x, axis=1, keepdims=True)
    var = jnp.mean((x - mean) ** 2, axis=1, keepdims=True)
    out = (x - mean) * lax.rsqrt(var + eps) * g
    if b is not None:
        out = out + b
    return out


if __name__ == "__main__":
    key = jax.random.PRNGKey(0)
    B, C, H, W = 2, 4, 16, 16          # x: NCHW

    k1, k2, k3 = jax.random.split(key, 3)
    x = jax.random.normal(k1, (B, C, H, W), dtype=jnp.float32)
    # Module initializes g=ones, b=zeros; use non-trivial values so the affine
    # part of the op is actually exercised.
    g = 1.0 + 0.1 * jax.random.normal(k2, (1, C, 1, 1), dtype=jnp.float32)
    b = 0.1 * jax.random.normal(k3, (1, C, 1, 1), dtype=jnp.float32)

    # ---- bias=False (module default) ----
    out_nb = layer_norm(x, g, None)
    jax.block_until_ready(out_nb)
    assert jnp.allclose(out_nb, _reference(x, g, None), atol=1e-5, rtol=1e-5)

    # ---- bias=True ----
    out_b = layer_norm(x, g, b)
    jax.block_until_ready(out_b)
    assert jnp.allclose(out_b, _reference(x, g, b), atol=1e-5, rtol=1e-5)

    # ---- non-128-multiple spatial size exercises the ragged-tail path ----
    x_odd = jax.random.normal(k1, (1, C, 10, 30), dtype=jnp.float32)  # HW=300
    out_odd = layer_norm(x_odd, g, None)
    jax.block_until_ready(out_odd)
    assert jnp.allclose(out_odd, _reference(x_odd, g, None), atol=1e-5, rtol=1e-5)

    print("KERNEL_OK")
</pallas_src>

<mosaic_0001>
module attributes {stable_mosaic.version = 11 : i64} {
  func.func @_layer_norm_kernel(%arg0: i32, %arg1: i32, %arg2: memref<1x4x128xf32, #tpu.memory_space<vmem>>, %arg3: memref<4x1xf32, #tpu.memory_space<vmem>>, %arg4: memref<1x4x128xf32, #tpu.memory_space<vmem>>) attributes {dimension_semantics = [#tpu.dimension_semantics<parallel>, #tpu.dimension_semantics<parallel>], iteration_bounds = array<i64: 2, 2>, scalar_prefetch = 0 : i64, scratch_operands = 0 : i64, tpu.core_type = #tpu.core_type<tc>, window_params = [{transform_indices = @transform_0, window_bounds = array<i64: 1, 4, 128>}, {pipeline_mode = #tpu.pipeline_mode<synchronous>, transform_indices = @transform_1, window_bounds = array<i64: 4, 1>}, {transform_indices = @transform_2, window_bounds = array<i64: 1, 4, 128>}]} {
    %c0 = arith.constant 0 : index
    %c0_0 = arith.constant 0 : index
    %c0_1 = arith.constant 0 : index
    %0 = vector.load %arg2[%c0, %c0_0, %c0_1] : memref<1x4x128xf32, #tpu.memory_space<vmem>>, vector<1x4x128xf32>
    %1 = vector.shape_cast %0 : vector<1x4x128xf32> to vector<4x128xf32>
    %cst = arith.constant dense<0.000000e+00> : vector<128xf32>
    %2 = vector.multi_reduction <add>, %1, %cst [0] : vector<4x128xf32> to vector<128xf32>
    %3 = vector.shape_cast %2 : vector<128xf32> to vector<1x128xf32>
    %cst_2 = arith.constant 4.000000e+00 : f32
    %4 = vector.broadcast %cst_2 : f32 to vector<1x128xf32>
    %5 = arith.divf %3, %4 : vector<1x128xf32>
    %6 = vector.broadcast %5 : vector<1x128xf32> to vector<4x128xf32>
    %7 = arith.subf %1, %6 : vector<4x128xf32>
    %8 = arith.mulf %7, %7 : vector<4x128xf32>
    %cst_3 = arith.constant dense<0.000000e+00> : vector<128xf32>
    %9 = vector.multi_reduction <add>, %8, %cst_3 [0] : vector<4x128xf32> to vector<128xf32>
    %10 = vector.shape_cast %9 : vector<128xf32> to vector<1x128xf32>
    %cst_4 = arith.constant 4.000000e+00 : f32
    %11 = vector.broadcast %cst_4 : f32 to vector<1x128xf32>
    %12 = arith.divf %10, %11 : vector<1x128xf32>
    %cst_5 = arith.constant 9.99999974E-6 : f32
    %13 = vector.broadcast %cst_5 : f32 to vector<1x128xf32>
    %14 = arith.addf %12, %13 : vector<1x128xf32>
    %15 = math.rsqrt %14 : vector<1x128xf32>
    %16 = vector.broadcast %15 : vector<1x128xf32> to vector<4x128xf32>
    %17 = arith.mulf %7, %16 : vector<4x128xf32>
    %c0_6 = arith.constant 0 : index
    %c0_7 = arith.constant 0 : index
    %18 = vector.load %arg3[%c0_6, %c0_7] : memref<4x1xf32, #tpu.memory_space<vmem>>, vector<4x1xf32>
    %19 = vector.broadcast %18 : vector<4x1xf32> to vector<4x128xf32>
    %20 = arith.mulf %17, %19 : vector<4x128xf32>
    %c0_8 = arith.constant 0 : index
    %c0_9 = arith.constant 0 : index
    %c0_10 = arith.constant 0 : index
    %21 = vector.load %arg4[%c0_8, %c0_9, %c0_10] : memref<1x4x128xf32, #tpu.memory_space<vmem>>, vector<1x4x128xf32>
    %22 = vector.shape_cast %21 : vector<1x4x128xf32> to vector<4x128xf32>
    %23 = vector.shape_cast %20 : vector<4x128xf32> to vector<1x4x128xf32>
    tpu.vector_store %arg4[%c0_8, %c0_9, %c0_10], %23 {strides = array<i32>} : memref<1x4x128xf32, #tpu.memory_space<vmem>>, vector<1x4x128xf32>,
    return
  }
  func.func @transform_0(%arg0: i32, %arg1: i32) -> (i32, i32, i32) {
    %c0_i32 = arith.constant 0 : i32
    %c0_i32_0 = arith.constant 0 : i32
    return %arg0, %c0_i32, %arg1 : i32, i32, i32
  }
  func.func @transform_1(%arg0: i32, %arg1: i32) -> (i32, i32) {
    %c0_i32 = arith.constant 0 : i32
    %c0_i32_0 = arith.constant 0 : i32
    %c0_i32_1 = arith.constant 0 : i32
    return %c0_i32, %c0_i32_0 : i32, i32
  }
  func.func @transform_2(%arg0: i32, %arg1: i32) -> (i32, i32, i32) {
    %c0_i32 = arith.constant 0 : i32
    %c0_i32_0 = arith.constant 0 : i32
    return %arg0, %c0_i32, %arg1 : i32, i32, i32
  }
}

</mosaic_0001>

<bundles_post_ra>
// kernel: tpu_custom_call.1
= control target key start
LH: loop header
LB: loop body
LE: loop exit
PB: predicated region body
PF: predicated region fallthrough
CT: control target
= control target key end

     0   :  { %7 = vsyncpa [#allocation3], 0  ;;  %s714_s0 = inlined_call_operand.hbm [shape: f32[2,4,256], index: 0, kind: input, shape index: {}]   ;;  %s715_s1 = inlined_call_operand.vmem [shape: f32[4,1], index: 1, kind: input, shape index: {}]   ;;  %s716_s2 = inlined_call_operand.hbm [shape: f32[2,4,256], index: 2, kind: output, shape index: {}]  }
   0x1   :  { %9 = vsyncpa [#allocation3 + $0x1], 0 }
   0x2   :  { %10 = vsyncpa [#allocation4], 0 }
   0x3   :  { %12 = vsyncpa [#allocation4 + $0x1], 0  ;;  %s551_s9 = smov 0   ;;  %s553_s10 = smov 0  }
   0x4   :  { %s555_s11 = smov 0   ;;  %s557_s12 = smov 0  }
   0x5   :  { %s559_s13 = smov 0   ;;  %s561_s14 = smov 0  }
   0x6   :  { %s563_s15 = smov 0   ;;  %s565_s16 = smov 0  }
   0x7 LB: > { %s310_s17 = sadd.s32 4294967295, %s531_s16   ;;  %s311_s18 = sadd.s32 4294967294, %s531_s16   ;;  %s531_s16 = sphi %s565_s16, %s18_s16   ;;  %s527_s15 = sphi %s563_s15, %s729_s15   ;;  %s523_s14 = sphi %s561_s14, %s728_s14   ;;  %s519_s13 = sphi %s559_s13, %s727_s13   ;;  %s515_s12 = sphi %s557_s12, %s726_s12   ;;  %s511_s11 = sphi %s555_s11, %s725_s11   ;;  %s507_s10 = sphi %s553_s10, %s724_s10   ;;  %s503_s9 = sphi %s551_s9, %s723_s9  }
   0x8   : > { %s27_s19 = sadd.s32 1, %s523_s14  ;;  %s30_s20 = sadd.s32 1, %s527_s15 }
   0x9   : > { %p28_p0 = scmp.ge.s32.totalorder %s27_s19, 2  ;;  %s39_s21 = sadd.s32 1, %s511_s11 }
   0xa   : > { %p46_p1 = scmp.ne.s32.totalorder %s511_s11, %s507_s10  ;;  %p47_p2 = scmp.eq.s32.totalorder %s531_s16, 0 }
   0xb   : > { %s731_s19 = smov (%p28_p0, %s27_s19), 0  ;;  %s733_s20 = smov (!%p28_p0, %s30_s20), %s527_s15 }
   0xc   : > { %s35_s22 = ssub.s32 %s523_s14, %s731_s19  ;;  %p604_p3 = por %p47_p2, %p46_p1 }
   0xd   : > { %p32_p4 = scmp.ge.s32.totalorder %s733_s20, 2  ;;  %p52_p5 = scmp.ne.s32.totalorder %s507_s10, %s503_s9 }
   0xe   : > { %p53_p6 = scmp.eq.s32.totalorder %s310_s17, 0  ;;  %p99_p7 = scmp.eq.s32.totalorder %s310_s17, 3 }
   0xf   : > { %s735_s20 = smov (%p32_p4, %s733_s20), 0  ;;  %p105_p10 = scmp.eq.s32.totalorder %s311_s18, 3 }
  0x10   : > { %p612_p8 = por %p53_p6, %p52_p5  ;;  %p616_p9 = por %p99_p7, %p46_p1 }
  0x11   : > { %s34_s26 = ssub.s32 %s527_s15, %s735_s20  ;;  %p622_p12 = por %p105_p10, %p52_p5 }
  0x12   : > { %s36_s27 = sor.u32 %s35_s22, %s34_s26  ;;  %p337_p13 = scmp.lt.s32.totalorder %s531_s16, 4 }
  0x13   : > { %p37_p11 = scmp.eq.s32.totalorder %s36_s27, 0  ;;  %s128_s29 = sand.u32 1, %s511_s11  }
  0x14   : > { %s720_s28 = scalar_select %p622_p12, 1, 0 }
  0x15   : > { %s629_s30 = scalar_select %p37_p11, %s511_s11, %s39_s21  }
  0x16   : > { %s314_s3 = sshll.u32 %s128_s29, 2  ;;  %s315_s4 = sshll.u32 %s527_s15, 1 }
  0x17   : > { %s137_s5 = sadd.s32 %s523_s14, %s315_s4  ;;  %s132_s6 = scalar_lea.vmem [#allocation2], %s314_s3 }
  0x18   : > { %s141_s7 = sshll.u32 %s132_s6, 4  ;;  %s316_s8 = sshll.u32 %s137_s5, 6  ;;  %s142_s7 = int_to_ptr.vmem [resolvable:$true] %s141_s7 }
  0x19   : > { %s139_s22 = scalar_lea.hbm %s714_s0, %s316_s8  ;;  %p638_p0 = pnand %p337_p13, %p604_p3 }
  0x1a   : > { %p317_p1 = scmp.ge.s32.totalorder %s531_s16, 1  ;;  %p146_p2 = scmp.lt.s32.totalorder %s531_s16, 5 }
  0x1b   : > { %s129_s21 = scalar_lea.sflag [#allocation3], %s128_s29  ;;  %p409_p4 = pneg %p638_p0 }
  0x1c   : > { %s420_s27 = scalar_lea.vmem %s142_s7, 64  ;;  %s533_s3 = smov [#allocation2]  }
  0x1d   : > { %p421_p5 = scmp.ne.s32.totalorder %s142_s7, %s420_s27  ;;  %s425_s4 = sshll.u32 %s533_s3, 4  ;;  %s426_s4 = int_to_ptr.vmem [resolvable:$false] %s425_s4 }
  0x1e   : > { %s427_s5 = scalar_lea.vmem %s426_s4, 128  ;;  %p428_p10 = scmp.lt.s32.totalorder %s142_s7, %s426_s4 }
  0x1f   : > { %p423_p6 = pnand %p421_p5, %p409_p4  ;;  %p429_p11 = scmp.lt.s32.totalorder %s427_s5, %s420_s27 }
  0x21   : > { %p424_p7 = pneg %p423_p6  ;;  %p430_p3 = por %p429_p11, %p428_p10 }
  0x23   : > { %p431_p13 = pnand %p430_p3, %p424_p7 }
  0x25   : > { %434 = shalt.err (!%p431_p13)
}
  0x26   : > { %332 = dma.hbm_to_vmem [thread:$0]  (!%p638_p0), %s139_s22, 64, %s142_s7, %s129_s21  }
  0x27   : > { %p147_p12 = pnand %p317_p1, %p146_p2 }
  0x28   : > { %s653_s23 = sand.u32 (!%p147_p12), 1, %s507_s10  }
  0x29   : > { %150 = sbr.rel (%p147_p12) target bundleno = 188 (0xbc), region = 28  ;;  %s318_s29 = sshll.u32 (!%p147_p12), %s653_s23, 2 }
  0x2a   : > { %s153_s6 = scalar_lea.sflag (!%p147_p12), [#allocation3], %s653_s23  ;;  %s156_s8 = scalar_lea.vmem (!%p147_p12), [#allocation2], %s318_s29 }
  0x2e   : > { %494 = dma.done.wait (%p612_p8), %s153_s6, 64  }
  0x2f   : > { %496 = vsyncadd (%p612_p8), %s153_s6, 4294967232  ;;  %v534_v0 = vmov 0   ;;  %v201_v1 = vld [vmem:[%s715_s1] sm:$0xf]  ;;  %vm178_vm0 = vcmask 1043456   ;;  %s321_s24 = sshll.u32 %s519_s13, 1 }
  0x30   : > { %404 = vset.pattern.permute.xlu0 %v534_v0  ;;  %v177_v2 = vld [vmem:[%s156_s8] sm:$0xf]  ;;  %s221_s18 = sadd.s32 %s515_s12, %s321_s24  ;;  %s176_s26 = scalar_lea.vmem [#allocation5], %s318_s29 }
  0x31   : > { %204 = vperm.xlu0 %404, %v201_v1   ;;  %v179_v3 = vsel %vm178_vm0, %v177_v2, 0.0  ;;  %s322_s22 = sshll.u32 %s221_s18, 6  ;;  %s225_s21 = sshll.u32 %s176_s26, 4  ;;  %s226_s21 = int_to_ptr.vmem [resolvable:$true] %s225_s21 }
  0x32   : > { %v180_v4 = vrot.slane %v179_v3, 4  ;;  %s223_s4 = scalar_lea.hbm %s716_s2, %s322_s22  ;;  %s210_s5 = scalar_lea.sflag [#allocation4], %s653_s23 }
  0x33   : > { %s435_s6 = scalar_lea.vmem %s226_s21, 64  ;;  %s535_s12 = smov [#allocation5]  }
  0x34   : > { %v181_v5 = vadd.f32 %v180_v4, %v179_v3  ;;  %p436_p8 = scmp.ne.s32.totalorder %s226_s21, %s435_s6  ;;  %s439_s13 = sshll.u32 %s535_s12, 4  ;;  %s440_s13 = int_to_ptr.vmem [resolvable:$false] %s439_s13 }
  0x35   : > { %s441_s8 = scalar_lea.vmem %s440_s13, 128  ;;  %p442_p1 = scmp.lt.s32.totalorder %s226_s21, %s440_s13 }
  0x36   : > { %v182_v6 = vrot.slane %v181_v5, 2  ;;  %p437_p12 = pnand %p436_p8, %p616_p9  ;;  %p443_p2 = scmp.lt.s32.totalorder %s441_s8, %s435_s6 }
  0x38   : > { %v183_v7 = vadd.f32 %v182_v6, %v181_v5  ;;  %p438_p0 = pneg %p437_p12  ;;  %p444_p4 = por %p443_p2, %p442_p1 }
  0x3a   : > { %v184_v8 = vrot.slane %v183_v7, 1  ;;  %p445_p5 = pnand %p444_p4, %p438_p0 }
  0x3c   : > { %v185_v9 = vadd.f32 %v184_v8, %v183_v7 }
  0x3e   : > { %v187_v10 = vmul.f32 0.25, %v185_v9 }
  0x40   : > { %v188_v11 = vsub.f32 %v177_v2, %v187_v10 }
  0x42   : > { %v189_v12 = vmul.f32 %v188_v11, %v188_v11 }
  0x44   : > { %v190_v13 = vsel %vm178_vm0, %v189_v12, 0.0 }
  0x45   : > { %v191_v14 = vrot.slane %v190_v13, 4 }
  0x47   : > { %v192_v15 = vadd.f32 %v191_v14, %v190_v13 }
  0x49   : > { %v193_v16 = vrot.slane %v192_v15, 2 }
  0x4b   : > { %v194_v17 = vadd.f32 %v193_v16, %v192_v15 }
  0x4d   : > { %v195_v18 = vrot.slane %v194_v17, 1 }
  0x4f   : > { %v196_v19 = vadd.f32 %v195_v18, %v194_v17 }
  0x51   : > { %v197_v20 = vmul.f32 0.25, %v196_v19 }
  0x53   : > { %v198_v21 = vadd.f32 1e-05, %v197_v20 }
  0x55   : > { %405 = vrsqrt.f32 %v198_v21 }
  0x62   : > { %v406_v22 = vpop.eup %405 }
  0x63   : > { %v200_v23 = vmul.f32 %v406_v22, %v188_v11 }
  0xac   : > { %v205_v24 = vpop.permute.xlu0 %204 }
  0xad   : > { %v207_v25 = vmul.f32 %v205_v24, %v200_v23 }
  0xaf   : > { %208 = vst [vmem:[%s176_s26] sm:$0xf] %v207_v25 }
  0xb0   : > { %448 = shalt.err (!%p445_p5)
}
  0xb1   : > { %s449_s29 = scalar_lea.hbm %s223_s4, 64  ;;  %s453_s17 = scalar_lea.hbm %s716_s2, 256 }
  0xb2   : > { %p450_p6 = scmp.ne.s32.totalorder %s223_s4, %s449_s29  ;;  %p454_p11 = scmp.lt.s32.totalorder %s223_s4, %s716_s2 }
  0xb3   : > { %p455_p3 = scmp.lt.s32.totalorder %s453_s17, %s449_s29 }
  0xb4   : > { %p451_p7 = pnand %p450_p6, %p616_p9 }
  0xb5   : > { %p456_p13 = por %p455_p3, %p454_p11 }
  0xb6   : > { %p452_p10 = pneg %p451_p7 }
  0xb8   : > { %p457_p8 = pnand %p456_p13, %p452_p10 }
  0xba   : > { %460 = shalt.err (!%p457_p8)
}
  0xbb   : > { %327 = dma.vmem_to_hbm [thread:$0]  (%p616_p9), %s226_s21, 64, %s223_s4, %s210_s5  }
  0xbc PF: > { %p338_p12 = scmp.ge.s32.totalorder %s531_s16, 2  ;;  %s237_s22 = sand.u32 1, %s503_s9  }
  0xbd   : > { %p722_p0 = scmp.ne.s32.totalorder %s720_s28, 0  ;;  %s238_s26 = scalar_lea.sflag [#allocation4], %s237_s22 }
  0xbf   : > { %p334_p1 = pnand %p338_p12, %p722_p0 }
  0xc1   : > { %p335_p2 = pneg %p334_p1 }
  0xc3   : > { %498 = dma.done.wait (%p335_p2), %s238_s26, 64  }
  0xc4   : > { %500 = vsyncadd (%p335_p2), %s238_s26, 4294967232  ;;  %s18_s16 = sadd.s32 1, %s531_s16   ;;  %s723_s9 = smov %s507_s10 }
  0xc5   : > { %p15_p4 = scmp.ge.s32.totalorder %s18_s16, 6   ;;  %s724_s10 = smov %s511_s11 }
  0xc6   : > { %s725_s11 = smov %s629_s30  ;;  %s726_s12 = smov %s523_s14 }
  0xc7   : > { %s727_s13 = smov %s527_s15  ;;  %s728_s14 = smov %s731_s19 }
  0xc8   : > { %s729_s15 = smov %s735_s20  ;;  %17 = sbr.rel (!%p15_p4) target bundleno = 7 (0x7), region = 73 }
  0xcd   :  { %243 = vsyncpa [#allocation3], 1 }
  0xce   :  { %245 = vsyncpa [#allocation3 + $0x1], 1 }
  0xcf   :  { %246 = vsyncpa [#allocation4], 1 }
  0xd0   :  { %248 = vsyncpa [#allocation4 + $0x1], 1 }

</bundles_post_ra>
